<compile_context>
chip_gen: v7x
topology: tpu7x:2x2x1
jax: 0.10.0
libtpu: 0.0.40
codegen_flags: <defaults>
</compile_context>

<pallas_src>
import functools

import jax
import jax.numpy as jnp
from jax.experimental import pallas as pl
from jax.experimental.pallas import tpu as pltpu

VMEM_LIMIT_BYTES = 32 * 1024 * 1024  # safe on v5e/v6e/v7x scoped-VMEM budgets


def _choose_tn(n):
    """Largest row tile (points per step) that divides N; keeps per-step working
    set a few MiB (fits v7x's 64 MiB VMEM with double-buffering headroom)."""
    for t in (512, 256, 128, 64, 32, 16, 8):
        if n % t == 0:
            return t
    return n  # fall back to the full extent (always a legal block)


# ----------------------------------------------------------------------------
# Fused (1x1-conv stack -> max over points) kernel
# ----------------------------------------------------------------------------
def _conv_stack_max_kernel(*refs, n_layers, relu_flags, w1_per_batch):
    x_ref = refs[0]
    o_ref = refs[-1]
    layer_refs = refs[1:-1]
    nt = pl.program_id(1)

    @pl.when(nt == 0)
    def _init():
        o_ref[...] = jnp.full_like(o_ref, -jnp.inf)

    h = x_ref[0].astype(jnp.bfloat16)                       # (TN, Cin0)
    for li in range(n_layers):
        w_ref, s_ref, b_ref = layer_refs[3 * li:3 * li + 3]
        w = w_ref[0] if (li == 0 and w1_per_batch) else w_ref[...]
        h = jnp.dot(h, w, preferred_element_type=jnp.float32)
        h = h * s_ref[...] + b_ref[...]                     # folded bias + BN (f32)
        if relu_flags[li]:
            h = jnp.maximum(h, 0.0)
        if li + 1 < n_layers:
            h = h.astype(jnp.bfloat16)                      # bf16 MXU inputs
    tile_max = jnp.max(h, axis=0, keepdims=True)[None]      # (1, 1, Cout)
    o_ref[...] = jnp.maximum(o_ref[...], tile_max)          # running max accumulator


def conv_stack_max(x, layers, relu_flags, *, w1_per_batch=False):
    """x: (B, N, Cin0) f32.  layers: list of (w, scale, bias);
    w is bf16 (Cin, Cout), or (B, Cin, Cout) for layer 0 if w1_per_batch.
    Returns max over N of the stacked 1x1-conv output: (B, Cout_last) f32."""
    B, N, cin0 = x.shape
    n_layers = len(layers)
    cout_last = layers[-1][0].shape[-1]
    tn = _choose_tn(N)
    grid = (B, N // tn)

    in_specs = [pl.BlockSpec((1, tn, cin0), lambda b, nt: (b, nt, 0))]
    inputs = [x]
    flops = 0
    bytes_acc = x.size * x.dtype.itemsize + B * cout_last * 4
    for li, (w, s, bias) in enumerate(layers):
        if li == 0 and w1_per_batch:
            _, cin, cout = w.shape
            in_specs.append(pl.BlockSpec((1, cin, cout), lambda b, nt: (b, 0, 0)))
        else:
            cin, cout = w.shape
            in_specs.append(pl.BlockSpec((cin, cout), lambda b, nt: (0, 0)))
        in_specs.append(pl.BlockSpec((1, cout), lambda b, nt: (0, 0)))
        in_specs.append(pl.BlockSpec((1, cout), lambda b, nt: (0, 0)))
        inputs += [w, s, bias]
        flops += 2 * B * N * cin * cout
        bytes_acc += w.size * w.dtype.itemsize + 2 * cout * 4

    kernel = functools.partial(
        _conv_stack_max_kernel, n_layers=n_layers,
        relu_flags=tuple(relu_flags), w1_per_batch=w1_per_batch)

    out = pl.pallas_call(
        kernel,
        grid=grid,
        out_shape=jax.ShapeDtypeStruct((B, 1, cout_last), jnp.float32),
        in_specs=in_specs,
        out_specs=pl.BlockSpec((1, 1, cout_last), lambda b, nt: (b, 0, 0)),
        compiler_params=pltpu.CompilerParams(
            dimension_semantics=("parallel", "arbitrary"),
            vmem_limit_bytes=VMEM_LIMIT_BYTES),
        cost_estimate=pl.CostEstimate(flops=int(flops), transcendentals=0,
                                      bytes_accessed=int(bytes_acc)),
    )(*inputs)
    return out.reshape(B, cout_last)


# ----------------------------------------------------------------------------
# Fused small-MLP kernel (B rows only -> single grid point, no HBM roundtrips
# of the (B,512)/(B,256) intermediates, 1 launch instead of 3)
# ----------------------------------------------------------------------------
def _mlp_kernel(*refs, n_layers, relu_flags):
    x_ref = refs[0]
    o_ref = refs[-1]
    layer_refs = refs[1:-1]
    h = x_ref[...].astype(jnp.bfloat16)
    for li in range(n_layers):
        w_ref, s_ref, b_ref = layer_refs[3 * li:3 * li + 3]
        h = jnp.dot(h, w_ref[...], preferred_element_type=jnp.float32)
        h = h * s_ref[...] + b_ref[...]
        if relu_flags[li]:
            h = jnp.maximum(h, 0.0)
        if li + 1 < n_layers:
            h = h.astype(jnp.bfloat16)
    o_ref[...] = h.astype(o_ref.dtype)


def fused_mlp(x, layers, relu_flags):
    """x: (B, Cin0) f32, layers: list of (w_bf16, scale, bias) -> (B, Cout_last) f32."""
    B, cin0 = x.shape
    n_layers = len(layers)
    cout_last = layers[-1][0].shape[-1]
    in_specs = [pl.BlockSpec((B, cin0), lambda i: (0, 0))]
    inputs = [x]
    for (w, s, bias) in layers:
        cin, cout = w.shape
        in_specs.append(pl.BlockSpec((cin, cout), lambda i: (0, 0)))
        in_specs.append(pl.BlockSpec((1, cout), lambda i: (0, 0)))
        in_specs.append(pl.BlockSpec((1, cout), lambda i: (0, 0)))
        inputs += [w, s, bias]
    kernel = functools.partial(_mlp_kernel, n_layers=n_layers,
                               relu_flags=tuple(relu_flags))
    return pl.pallas_call(
        kernel,
        grid=(1,),
        out_shape=jax.ShapeDtypeStruct((B, cout_last), jnp.float32),
        in_specs=in_specs,
        out_specs=pl.BlockSpec((B, cout_last), lambda i: (0, 0)),
        compiler_params=pltpu.CompilerParams(
            dimension_semantics=("arbitrary",),
            vmem_limit_bytes=VMEM_LIMIT_BYTES),
    )(*inputs)


# ----------------------------------------------------------------------------
# Deterministic parameter construction (synthetic weights, no checkpoint load)
# ----------------------------------------------------------------------------
def make_layer(key, cin, cout, with_bn=True):
    k1, k2, k3, k4 = jax.random.split(key, 4)
    w = jax.random.normal(k1, (cin, cout), jnp.float32) * 0.05
    b = jax.random.normal(k2, (cout,), jnp.float32) * 0.05
    if with_bn:
        gamma = 1.0 + 0.1 * jax.random.normal(k3, (cout,), jnp.float32)
        beta = 0.1 * jax.random.normal(k4, (cout,), jnp.float32)
        mean = jnp.zeros((cout,), jnp.float32)   # BatchNorm running stats (init values)
        var = jnp.ones((cout,), jnp.float32)
        eps = 1e-5
        bn_scale = gamma / jnp.sqrt(var + eps)
        bn_shift = beta - mean * bn_scale
    else:
        bn_scale = jnp.ones((cout,), jnp.float32)
        bn_shift = jnp.zeros((cout,), jnp.float32)
    # fold layer bias + BN into a single per-channel affine applied post-matmul
    eff_scale = bn_scale.reshape(1, cout)
    eff_bias = (b * bn_scale + bn_shift).reshape(1, cout)
    return w, eff_scale, eff_bias


def make_params(key, input_dim, num_latents, latent_dim):
    ks = jax.random.split(key, 14)
    stn = {
        "conv1": make_layer(ks[0], input_dim, 64),
        "conv2": make_layer(ks[1], 64, 128),
        "conv3": make_layer(ks[2], 128, 1024),
        "fc1": make_layer(ks[3], 1024, 512),
        "fc2": make_layer(ks[4], 512, 256),
        "fc3": make_layer(ks[5], 256, input_dim * input_dim, with_bn=False),
    }
    feat = {
        "conv1": make_layer(ks[6], input_dim, 64),
        "conv2": make_layer(ks[7], 64, 64),
        "conv3": make_layer(ks[8], 64, 64),
        "conv4": make_layer(ks[9], 64, 128),
        "conv5": make_layer(ks[10], 128, 1024),
    }
    head = {
        "fc1": make_layer(ks[11], 1024, 512),
        "fc2": make_layer(ks[12], 512, 256),
        "fc3": make_layer(ks[13], 256, num_latents * latent_dim, with_bn=False),
    }
    return {"stn": stn, "feat": feat, "head": head}


# ----------------------------------------------------------------------------
# Forward pass (4 fused Pallas kernels + tiny JAX glue)
# ----------------------------------------------------------------------------
def pointnet_latent_forward(x_ncw, params, num_latents, latent_dimension,
                            normalize_latents=False):
    """x_ncw: (B, input_dim, N) — same layout as the PyTorch Conv1d input."""
    B, D, N = x_ncw.shape
    bf16 = jnp.bfloat16
    x = jnp.transpose(x_ncw, (0, 2, 1))            # (B, N, D), channels lane-major

    def cast_layer(layer):
        w, s, b = layer
        return w.astype(bf16), s, b

    # ---- STNkd: fused conv1-3 + max, then fused fc1-3 (identity add folded) ----
    p = params["stn"]
    g = conv_stack_max(
        x,
        [cast_layer(p["conv1"]), cast_layer(p["conv2"]), cast_layer(p["conv3"])],
        relu_flags=(True, True, True))                       # (B, 1024)
    w3, s3, b3 = p["fc3"]
    b3_eye = b3 + jnp.eye(D, dtype=jnp.float32).reshape(1, D * D)
    trans = fused_mlp(
        g,
        [cast_layer(p["fc1"]), cast_layer(p["fc2"]), (w3.astype(bf16), s3, b3_eye)],
        relu_flags=(True, True, False)).reshape(B, D, D)     # (B, D, D)

    # ---- PointNetfeat (global_feat=True, feature_transform=False) ----
    p = params["feat"]
    # fold bmm(x, trans) into conv1:  (x @ trans) @ W1 == x @ (trans @ W1)
    w1_eff = jnp.einsum("bij,jk->bik", trans, p["conv1"][0]).astype(bf16)  # (B, D, 64)
    feat_layers = [(w1_eff, p["conv1"][1], p["conv1"][2])] + [
        cast_layer(p[name]) for name in ("conv2", "conv3", "conv4", "conv5")]
    gfeat = conv_stack_max(x, feat_layers,
                           relu_flags=(True, True, True, True, False),
                           w1_per_batch=True)                # (B, 1024)
    trans_feat = None                                        # feature_transform=False

    # ---- latent head (fused fc1-3) ----
    p = params["head"]
    # TODO(synk): nn.Dropout(p=0.3) is identity in eval mode; train-mode stochastic dropout not implemented.
    y = fused_mlp(gfeat,
                  [cast_layer(p["fc1"]), cast_layer(p["fc2"]), cast_layer(p["fc3"])],
                  relu_flags=(True, True, False))
    y = y.reshape(B, num_latents, latent_dimension)
    if normalize_latents:
        y = y / jnp.maximum(jnp.linalg.norm(y, axis=2, keepdims=True), 1e-12)
    return y, trans, trans_feat


# ----------------------------------------------------------------------------
if __name__ == "__main__":
    key = jax.random.PRNGKey(0)
    B, D, N = 2, 4, 16                 # batch, input_dim, num points
    num_latents, latent_dim = 8, 32

    kx, kp = jax.random.split(key)
    x = jax.random.normal(kx, (B, D, N), jnp.float32)   # PyTorch NCW Conv1d input
    params = make_params(kp, D, num_latents, latent_dim)

    latents, trans, trans_feat = pointnet_latent_forward(
        x, params, num_latents, latent_dim, normalize_latents=False)

    jax.block_until_ready(latents)
    jax.block_until_ready(trans)
    assert latents.shape == (B, num_latents, latent_dim)
    assert trans.shape == (B, D, D)
    assert trans_feat is None
    print("KERNEL_OK")
</pallas_src>

<mosaic_0001>
module attributes {stable_mosaic.version = 11 : i64} {
  func.func @_conv_stack_max_kernel(%arg0: i32, %arg1: i32, %arg2: memref<1x16x4xf32, #tpu.memory_space<vmem>>, %arg3: memref<4x64xbf16, #tpu.memory_space<vmem>>, %arg4: memref<1x64xf32, #tpu.memory_space<vmem>>, %arg5: memref<1x64xf32, #tpu.memory_space<vmem>>, %arg6: memref<64x128xbf16, #tpu.memory_space<vmem>>, %arg7: memref<1x128xf32, #tpu.memory_space<vmem>>, %arg8: memref<1x128xf32, #tpu.memory_space<vmem>>, %arg9: memref<128x1024xbf16, #tpu.memory_space<vmem>>, %arg10: memref<1x1024xf32, #tpu.memory_space<vmem>>, %arg11: memref<1x1024xf32, #tpu.memory_space<vmem>>, %arg12: memref<1x1x1024xf32, #tpu.memory_space<vmem>>) attributes {dimension_semantics = [#tpu.dimension_semantics<parallel>, #tpu.dimension_semantics<arbitrary>], iteration_bounds = array<i64: 2, 1>, scalar_prefetch = 0 : i64, scratch_operands = 0 : i64, tpu.core_type = #tpu.core_type<tc>, window_params = [{transform_indices = @transform_0, window_bounds = array<i64: 1, 16, 4>}, {pipeline_mode = #tpu.pipeline_mode<synchronous>, transform_indices = @transform_1, window_bounds = array<i64: 4, 64>}, {pipeline_mode = #tpu.pipeline_mode<synchronous>, transform_indices = @transform_2, window_bounds = array<i64: 1, 64>}, {pipeline_mode = #tpu.pipeline_mode<synchronous>, transform_indices = @transform_3, window_bounds = array<i64: 1, 64>}, {pipeline_mode = #tpu.pipeline_mode<synchronous>, transform_indices = @transform_4, window_bounds = array<i64: 64, 128>}, {pipeline_mode = #tpu.pipeline_mode<synchronous>, transform_indices = @transform_5, window_bounds = array<i64: 1, 128>}, {pipeline_mode = #tpu.pipeline_mode<synchronous>, transform_indices = @transform_6, window_bounds = array<i64: 1, 128>}, {pipeline_mode = #tpu.pipeline_mode<synchronous>, transform_indices = @transform_7, window_bounds = array<i64: 128, 1024>}, {pipeline_mode = #tpu.pipeline_mode<synchronous>, transform_indices = @transform_8, window_bounds = array<i64: 1, 1024>}, {pipeline_mode = #tpu.pipeline_mode<synchronous>, transform_indices = @transform_9, window_bounds = array<i64: 1, 1024>}, {transform_indices = @transform_10, window_bounds = array<i64: 1, 1, 1024>}]} {
    %c0_i32 = arith.constant 0 : i32
    %0 = arith.cmpi eq, %arg1, %c0_i32 : i32
    %1 = arith.extui %0 : i1 to i32
    %c0_i32_0 = arith.constant 0 : i32
    %2 = arith.cmpi ne, %1, %c0_i32_0 : i32
    scf.if %2 {
      %cst_33 = arith.constant 0xFF800000 : f32
      %44 = vector.broadcast %cst_33 : f32 to vector<1x1x1024xf32>
      %c0_34 = arith.constant 0 : index
      %c0_35 = arith.constant 0 : index
      %c0_36 = arith.constant 0 : index
      %45 = vector.load %arg12[%c0_34, %c0_35, %c0_36] : memref<1x1x1024xf32, #tpu.memory_space<vmem>>, vector<1x1x1024xf32>
      tpu.vector_store %arg12[%c0_34, %c0_35, %c0_36], %44 {strides = array<i32>} : memref<1x1x1024xf32, #tpu.memory_space<vmem>>, vector<1x1x1024xf32>,
    } else {
    }
    %c0 = arith.constant 0 : index
    %c0_1 = arith.constant 0 : index
    %c0_2 = arith.constant 0 : index
    %3 = vector.load %arg2[%c0, %c0_1, %c0_2] : memref<1x16x4xf32, #tpu.memory_space<vmem>>, vector<1x16x4xf32>
    %4 = vector.shape_cast %3 : vector<1x16x4xf32> to vector<16x4xf32>
    %5 = arith.truncf %4 : vector<16x4xf32> to vector<16x4xbf16>
    %c0_3 = arith.constant 0 : index
    %c0_4 = arith.constant 0 : index
    %6 = vector.load %arg3[%c0_3, %c0_4] : memref<4x64xbf16, #tpu.memory_space<vmem>>, vector<4x64xbf16>
    %cst = arith.constant dense<0.000000e+00> : vector<16x64xf32>
    %7 = tpu.matmul %5, %6, %cst {dimension_numbers = #tpu.dot_dimension_numbers<[1], [0], [0], [1], [0, 0, 1, 1], [], []>} : vector<16x4xbf16>, vector<4x64xbf16>, vector<16x64xf32> -> vector<16x64xf32>
    %c0_5 = arith.constant 0 : index
    %c0_6 = arith.constant 0 : index
    %8 = vector.load %arg4[%c0_5, %c0_6] : memref<1x64xf32, #tpu.memory_space<vmem>>, vector<1x64xf32>
    %9 = vector.broadcast %8 : vector<1x64xf32> to vector<16x64xf32>
    %10 = arith.mulf %7, %9 : vector<16x64xf32>
    %c0_7 = arith.constant 0 : index
    %c0_8 = arith.constant 0 : index
    %11 = vector.load %arg5[%c0_7, %c0_8] : memref<1x64xf32, #tpu.memory_space<vmem>>, vector<1x64xf32>
    %12 = vector.broadcast %11 : vector<1x64xf32> to vector<16x64xf32>
    %13 = arith.addf %10, %12 : vector<16x64xf32>
    %cst_9 = arith.constant 0.000000e+00 : f32
    %14 = vector.broadcast %cst_9 : f32 to vector<16x64xf32>
    %15 = arith.maximumf %13, %14 : vector<16x64xf32>
    %16 = arith.truncf %15 : vector<16x64xf32> to vector<16x64xbf16>
    %c0_10 = arith.constant 0 : index
    %c0_11 = arith.constant 0 : index
    %17 = vector.load %arg6[%c0_10, %c0_11] : memref<64x128xbf16, #tpu.memory_space<vmem>>, vector<64x128xbf16>
    %cst_12 = arith.constant dense<0.000000e+00> : vector<16x128xf32>
    %18 = tpu.matmul %16, %17, %cst_12 {dimension_numbers = #tpu.dot_dimension_numbers<[1], [0], [0], [1], [0, 0, 1, 1], [], []>} : vector<16x64xbf16>, vector<64x128xbf16>, vector<16x128xf32> -> vector<16x128xf32>
    %c0_13 = arith.constant 0 : index
    %c0_14 = arith.constant 0 : index
    %19 = vector.load %arg7[%c0_13, %c0_14] : memref<1x128xf32, #tpu.memory_space<vmem>>, vector<1x128xf32>
    %20 = vector.broadcast %19 : vector<1x128xf32> to vector<16x128xf32>
    %21 = arith.mulf %18, %20 : vector<16x128xf32>
    %c0_15 = arith.constant 0 : index
    %c0_16 = arith.constant 0 : index
    %22 = vector.load %arg8[%c0_15, %c0_16] : memref<1x128xf32, #tpu.memory_space<vmem>>, vector<1x128xf32>
    %23 = vector.broadcast %22 : vector<1x128xf32> to vector<16x128xf32>
    %24 = arith.addf %21, %23 : vector<16x128xf32>
    %cst_17 = arith.constant 0.000000e+00 : f32
    %25 = vector.broadcast %cst_17 : f32 to vector<16x128xf32>
    %26 = arith.maximumf %24, %25 : vector<16x128xf32>
    %27 = arith.truncf %26 : vector<16x128xf32> to vector<16x128xbf16>
    %c0_18 = arith.constant 0 : index
    %c0_19 = arith.constant 0 : index
    %28 = vector.load %arg9[%c0_18, %c0_19] : memref<128x1024xbf16, #tpu.memory_space<vmem>>, vector<128x1024xbf16>
    %cst_20 = arith.constant dense<0.000000e+00> : vector<16x1024xf32>
    %29 = tpu.matmul %27, %28, %cst_20 {dimension_numbers = #tpu.dot_dimension_numbers<[1], [0], [0], [1], [0, 0, 1, 1], [], []>} : vector<16x128xbf16>, vector<128x1024xbf16>, vector<16x1024xf32> -> vector<16x1024xf32>
    %c0_21 = arith.constant 0 : index
    %c0_22 = arith.constant 0 : index
    %30 = vector.load %arg10[%c0_21, %c0_22] : memref<1x1024xf32, #tpu.memory_space<vmem>>, vector<1x1024xf32>
    %31 = vector.broadcast %30 : vector<1x1024xf32> to vector<16x1024xf32>
    %32 = arith.mulf %29, %31 : vector<16x1024xf32>
    %c0_23 = arith.constant 0 : index
    %c0_24 = arith.constant 0 : index
    %33 = vector.load %arg11[%c0_23, %c0_24] : memref<1x1024xf32, #tpu.memory_space<vmem>>, vector<1x1024xf32>
    %34 = vector.broadcast %33 : vector<1x1024xf32> to vector<16x1024xf32>
    %35 = arith.addf %32, %34 : vector<16x1024xf32>
    %cst_25 = arith.constant 0.000000e+00 : f32
    %36 = vector.broadcast %cst_25 : f32 to vector<16x1024xf32>
    %37 = arith.maximumf %35, %36 : vector<16x1024xf32>
    %cst_26 = arith.constant dense<0xFF800000> : vector<1024xf32>
    %38 = vector.multi_reduction <maximumf>, %37, %cst_26 [0] : vector<16x1024xf32> to vector<1024xf32>
    %39 = vector.shape_cast %38 : vector<1024xf32> to vector<1x1024xf32>
    %40 = vector.shape_cast %39 : vector<1x1024xf32> to vector<1x1x1024xf32>
    %c0_27 = arith.constant 0 : index
    %c0_28 = arith.constant 0 : index
    %c0_29 = arith.constant 0 : index
    %41 = vector.load %arg12[%c0_27, %c0_28, %c0_29] : memref<1x1x1024xf32, #tpu.memory_space<vmem>>, vector<1x1x1024xf32>
    %42 = arith.maximumf %41, %40 : vector<1x1x1024xf32>
    %c0_30 = arith.constant 0 : index
    %c0_31 = arith.constant 0 : index
    %c0_32 = arith.constant 0 : index
    %43 = vector.load %arg12[%c0_30, %c0_31, %c0_32] : memref<1x1x1024xf32, #tpu.memory_space<vmem>>, vector<1x1x1024xf32>
    tpu.vector_store %arg12[%c0_30, %c0_31, %c0_32], %42 {strides = array<i32>} : memref<1x1x1024xf32, #tpu.memory_space<vmem>>, vector<1x1x1024xf32>,
    return
  }
  func.func @transform_0(%arg0: i32, %arg1: i32) -> (i32, i32, i32) {
    %c0_i32 = arith.constant 0 : i32
    %c0_i32_0 = arith.constant 0 : i32
    return %arg0, %arg1, %c0_i32 : i32, i32, i32
  }
  func.func @transform_1(%arg0: i32, %arg1: i32) -> (i32, i32) {
    %c0_i32 = arith.constant 0 : i32
    %c0_i32_0 = arith.constant 0 : i32
    %c0_i32_1 = arith.constant 0 : i32
    return %c0_i32, %c0_i32_0 : i32, i32
  }
  func.func @transform_2(%arg0: i32, %arg1: i32) -> (i32, i32) {
    %c0_i32 = arith.constant 0 : i32
    %c0_i32_0 = arith.constant 0 : i32
    %c0_i32_1 = arith.constant 0 : i32
    return %c0_i32, %c0_i32_0 : i32, i32
  }
  func.func @transform_3(%arg0: i32, %arg1: i32) -> (i32, i32) {
    %c0_i32 = arith.constant 0 : i32
    %c0_i32_0 = arith.constant 0 : i32
    %c0_i32_1 = arith.constant 0 : i32
    return %c0_i32, %c0_i32_0 : i32, i32
  }
  func.func @transform_4(%arg0: i32, %arg1: i32) -> (i32, i32) {
    %c0_i32 = arith.constant 0 : i32
    %c0_i32_0 = arith.constant 0 : i32
    %c0_i32_1 = arith.constant 0 : i32
    return %c0_i32, %c0_i32_0 : i32, i32
  }
  func.func @transform_5(%arg0: i32, %arg1: i32) -> (i32, i32) {
    %c0_i32 = arith.constant 0 : i32
    %c0_i32_0 = arith.constant 0 : i32
    %c0_i32_1 = arith.constant 0 : i32
    return %c0_i32, %c0_i32_0 : i32, i32
  }
  func.func @transform_6(%arg0: i32, %arg1: i32) -> (i32, i32) {
    %c0_i32 = arith.constant 0 : i32
    %c0_i32_0 = arith.constant 0 : i32
    %c0_i32_1 = arith.constant 0 : i32
    return %c0_i32, %c0_i32_0 : i32, i32
  }
  func.func @transform_7(%arg0: i32, %arg1: i32) -> (i32, i32) {
    %c0_i32 = arith.constant 0 : i32
    %c0_i32_0 = arith.constant 0 : i32
    %c0_i32_1 = arith.constant 0 : i32
    return %c0_i32, %c0_i32_0 : i32, i32
  }
  func.func @transform_8(%arg0: i32, %arg1: i32) -> (i32, i32) {
    %c0_i32 = arith.constant 0 : i32
    %c0_i32_0 = arith.constant 0 : i32
    %c0_i32_1 = arith.constant 0 : i32
    return %c0_i32, %c0_i32_0 : i32, i32
  }
  func.func @transform_9(%arg0: i32, %arg1: i32) -> (i32, i32) {
    %c0_i32 = arith.constant 0 : i32
    %c0_i32_0 = arith.constant 0 : i32
    %c0_i32_1 = arith.constant 0 : i32
    return %c0_i32, %c0_i32_0 : i32, i32
  }
  func.func @transform_10(%arg0: i32, %arg1: i32) -> (i32, i32, i32) {
    %c0_i32 = arith.constant 0 : i32
    %c0_i32_0 = arith.constant 0 : i32
    %c0_i32_1 = arith.constant 0 : i32
    return %arg0, %c0_i32, %c0_i32_0 : i32, i32, i32
  }
}

</mosaic_0001>

<bundles_post_ra>
// kernel: tpu_custom_call.1
= control target key start
LH: loop header
LB: loop body
LE: loop exit
PB: predicated region body
PF: predicated region fallthrough
CT: control target
= control target key end

     0   :  { %15 = vsyncpa [#allocation3], 0  ;;  %s2089_s0 = inlined_call_operand.vmem [shape: f32[2,16,4], index: 0, kind: input, shape index: {}]   ;;  %s2090_s1 = inlined_call_operand.vmem [shape: bf16[4,64], index: 1, kind: input, shape index: {}]   ;;  %s2091_s2 = inlined_call_operand.vmem [shape: f32[1,64], index: 2, kind: input, shape index: {}]   ;;  %s2092_s3 = inlined_call_operand.vmem [shape: f32[1,64], index: 3, kind: input, shape index: {}]   ;;  %s2093_s4 = inlined_call_operand.vmem [shape: bf16[64,128], index: 4, kind: input, shape index: {}]   ;;  %s2094_s5 = inlined_call_operand.vmem [shape: f32[1,128], index: 5, kind: input, shape index: {}]   ;;  %s2095_s6 = inlined_call_operand.vmem [shape: f32[1,128], index: 6, kind: input, shape index: {}]   ;;  %s2096_s7 = inlined_call_operand.hbm [shape: bf16[128,1024], index: 7, kind: input, shape index: {}]   ;;  %s2097_s8 = inlined_call_operand.vmem [shape: f32[1,1024], index: 8, kind: input, shape index: {}]   ;;  %s2098_s9 = inlined_call_operand.vmem [shape: f32[1,1024], index: 9, kind: input, shape index: {}]   ;;  %s2099_s10 = inlined_call_operand.hbm [shape: f32[2,1,1024], index: 10, kind: output, shape index: {}]  }
   0x1   :  { %16 = vsyncpa [#allocation4], 0 }
   0x2   :  { %18 = vsyncpa [#allocation4 + $0x1], 0  ;;  %s1852_s13 = smov 0   ;;  %s1854_s14 = smov 0  }
   0x3   :  { %s1856_s15 = smov 0   ;;  %s1858_s16 = smov 0  }
   0x4   :  { %s1860_s17 = smov 0   ;;  %s1862_s18 = smov 0  }
   0x5 LB: > { %2106 = sst [smem:[#allocation8_spill]] %s1783_s17  ;;  %s1484_s19 = sadd.s32 4294967295, %s1787_s18   ;;  %s1787_s18 = sphi %s1862_s18, %s24_s18   ;;  %s1783_s17 = sphi %s1860_s17, %s2118_s17   ;;  %s1779_s16 = sphi %s1858_s16, %s2117_s16   ;;  %s1775_s15 = sphi %s1856_s15, %s2121_s15   ;;  %s1771_s14 = sphi %s1854_s14, %s2120_s14   ;;  %s1767_s13 = sphi %s1852_s13, %s2119_s13  }
   0x6   : > { %s1485_s20 = sadd.s32 4294967294, %s1787_s18   ;;  %s36_s21 = sadd.s32 1, %s1783_s17 }
   0x7   : > { %s260_s22 = sadd.s32 1, %s1775_s15  ;;  %p38_p0 = scmp.ge.s32.totalorder %s36_s21, 2 }
   0x8   : > { %p270_p1 = scmp.ne.s32.totalorder %s1775_s15, %s1771_s14  ;;  %p271_p2 = scmp.eq.s32.totalorder %s1484_s19, 1 }
   0x9   : > { %p276_p3 = scmp.ne.s32.totalorder %s1771_s14, %s1767_s13  ;;  %s2123_s21 = smov (%p38_p0, %s36_s21), 0 }
   0xa   : > { %2107 = sst [smem:[#allocation9_spill]] %s2123_s21  ;;  %p1892_p4 = por %p271_p2, %p270_p1 }
   0xb   : > { %p277_p5 = scmp.eq.s32.totalorder %s1485_s20, 1  ;;  %s257_s24 = ssub.s32 %s1783_s17, %s2123_s21 }
   0xc   : > { %s2108_s23 = scalar_select %p1892_p4, 1, 0 }
   0xd   : > { %p1486_p6 = scmp.ge.s32.totalorder %s1787_s18, 1  ;;  %p258_p7 = scmp.eq.s32.totalorder %s257_s24, 0 }
   0xe   : > { %p1899_p8 = por %p277_p5, %p276_p3  ;;  %p284_p9 = scmp.lt.s32.totalorder %s1787_s18, 3 }
   0xf   : > { %s1905_s26 = scalar_select %p258_p7, %s1775_s15, %s260_s22  }
  0x10   : > { %s2109_s25 = scalar_select %p1899_p8, 1, 0 }
  0x11   : > { %p1907_p10 = pnand %p1486_p6, %p284_p9  ;;  %p1911_p11 = scmp.eq.s32.totalorder %s1484_s19, 0 }
  0x12   : > { %s1789_s29 = smov [#allocation2]   ;;  %s1677_s22 = scalar_lea.hbm %s2096_s7, 8192 }
  0x13   : > { %s2110_s27 = scalar_select %p1907_p10, 1, 0 }
  0x14   : > { %s2111_s28 = scalar_select %p1911_p11, 1, 0 }
  0x15   : > { %p1606_p12 = pneg %p1907_p10  ;;  %s314_s30 = sshll.u32 %s1789_s29, 4  ;;  %s315_s30 = int_to_ptr.vmem [resolvable:$true] %s314_s30 }
  0x16   : > { %p1678_p0 = scmp.ne.s32.totalorder %s2096_s7, %s1677_s22  ;;  %p1684_p5 = scmp.lt.u32.totalorder %s1677_s22, %s2096_s7 }
  0x17   : > { %p1919_p13 = pnand %p1911_p11, %p1606_p12 }
  0x19   : > { %p1679_p1 = pneg %p1919_p13 }
  0x1b   : > { %p1680_p2 = pnand %p1679_p1, %p1678_p0 }
  0x1d   : > { %p1681_p3 = pneg %p1680_p2 }
  0x1f   : > { %p1686_p6 = pnand %p1684_p5, %p1681_p3 }
  0x21   : > { %1689 = shalt.err (!%p1686_p6)
}
  0x22   : > { %s1690_s17 = scalar_lea.vmem %s315_s30, 8192  ;;  %p1698_p8 = scmp.lt.s32.totalorder %s315_s30, %s315_s30 }
  0x23   : > { %p1691_p7 = scmp.ne.s32.totalorder %s315_s30, %s1690_s17  ;;  %p1699_p4 = scmp.lt.s32.totalorder %s1690_s17, %s1690_s17 }
  0x25   : > { %p1693_p9 = pnand %p1691_p7, %p1679_p1  ;;  %p1700_p11 = por %p1699_p4, %p1698_p8 }
  0x27   : > { %p1694_p12 = pneg %p1693_p9 }
  0x29   : > { %p1701_p10 = pnand %p1700_p11, %p1694_p12 }
  0x2b   : > { %1704 = shalt.err (!%p1701_p10)
}
  0x2c   : > { %s1790_s12 = smov 512   ;;  %s1791_s20 = smov 32  }
  0x2d   : > { %1609 = dma.hbm_to_vmem [thread:$0]  (!%p1919_p13), %s2096_s7, 8192, %s315_s30, [#allocation3], %s1790_s12, %s1790_s12, %s1791_s20  }
  0x2e   : > { %p2113_p0 = scmp.ne.s32.totalorder %s2110_s27, 0 }
  0x2f   : > { %p2114_p2 = scmp.ne.s32.totalorder (!%p2113_p0), %s2111_s28, 0 }
  0x30   : > { %349 = sbr.rel (%p2113_p0) target bundleno = 800 (0x320), region = 60 }
  0x37   : > { %1758 = dma.done.wait (%p2114_p2), [#allocation3], 8192  }
  0x38   : > { %1760 = vsyncadd (%p2114_p2), [#allocation3], 4294959104  ;;  %p392_p4 = scmp.lt.s32.totalorder %s1779_s16, 1  ;;  %v1792_v0 = vmov 0.0   ;;  %vm1793_vm0 = vmmov 0   ;;  %vm415_vm1 = vcmask 1041408  }
  0x39   : > { %1582 = vmatprep.subr.bf16.mxu0 %v1792_v0  ;;  %1584 = vmatprep.mubr.msk.bf16.mxu0 %vm1793_vm0, %v1792_v0  ;;  %v410_v1 = vld [vmem:[%s2090_s1] sm:$0x3]  ;;  %vm411_vm2 = vcmask 31744   ;;  %v1674_v7 = vld [vmem:[%s2093_s4 + $0x8] sm:$0xff]   ;;  %v1675_v8 = vld [vmem:[%s2093_s4 + $0x10] sm:$0xff]   ;;  %vm513_vm3 = vcmask 523264  }
  0x3a   : > { %s393_s17 = scalar_select %p392_p4, %s1779_s16, 1  ;;  %1588 = vmatprep.subr.bf16.mxu1 %v1792_v0  ;;  %1596 = vmatprep.mubr.msk.bf16.mxu1 %vm1793_vm0, %v1792_v0  ;;  %v417_v4 = vsel %vm415_vm1, %v410_v1, 0  ;;  %v1673_v6 = vld [vmem:[%s2093_s4] sm:$0xff]   ;;  %v1676_v9 = vld [vmem:[%s2093_s4 + $0x18] sm:$0xff]   ;;  %v579_v10 = vld [vmem:[#allocation2] sm:$0xff] }
  0x3b   : > { %1583 = vmatpush3.bf16.msra.mxu0 %v417_v4  ;;  %1589 = vmatpush3.bf16.msra.mxu1 %v1673_v6  ;;  %v583_v11 = vld [vmem:[#allocation2 + $0x20] sm:$0xff]  ;;  %v580_v12 = vld [vmem:[#allocation2 + $0x8] sm:$0xff]  ;;  %v1495_v38 = vld [vmem:[%s2091_s2] ss:$0 sm:$0xff]  ;;  %s388_s30 = sand.u32 1, %s1771_s14   ;;  %s1574_s22 = sshll.u32 %s1779_s16, 7 }
  0x3c   : > { %s1573_s21 = sshll.u32 %s393_s17, 4  ;;  %1590 = vmatprep.subr.bf16.mxu1 %v1792_v0  ;;  %v1504_v13 = vcombine.low %v579_v10, %v583_v11  ;;  %v1505_v14 = vcombine.high %v579_v10, %v583_v11  ;;  %v584_v15 = vld [vmem:[#allocation2 + $0x28] sm:$0xff]  ;;  %v587_v16 = vld [vmem:[#allocation2 + $0x40] sm:$0xff]  ;;  %v1496_v40 = vld [vmem:[%s2092_s3] ss:$0 sm:$0xff]  ;;  %s2042_s19 = scalar_lea.hbm %s2099_s10, %s1574_s22 }
  0x3d   : > { %s399_s11 = scalar_lea.vmem %s2089_s0, %s1573_s21  ;;  %v591_v17 = vld [vmem:[#allocation2 + $0x60] sm:$0xff]  ;;  %v1506_v18 = vcombine.low %v580_v12, %v584_v15  ;;  %v1507_v19 = vcombine.high %v580_v12, %v584_v15  ;;  %v588_v48 = vld [vmem:[#allocation2 + $0x48] sm:$0xff]  ;;  %s1385_s24 = scalar_lea.sflag [#allocation4], %s388_s30 }
  0x3e   : > { %v407_v2 = vld [vmem:[%s399_s11] sm:$0xff]  ;;  %v408_v3 = vld [vmem:[%s399_s11 + $0x8] sm:$0xff]  ;;  %v1513_v20 = vcombine.high %v587_v16, %v591_v17  ;;  %963 = vmatprep.subr.bf16.mxu0 %v1505_v14  ;;  %v1512_v21 = vcombine.low %v587_v16, %v591_v17  ;;  %v595_v22 = vld [vmem:[#allocation2 + $0x80] sm:$0xff]  ;;  %s1491_s11 = sshll.u32 %s388_s30, 3  ;;  %p2115_p10 = scmp.ne.s32.totalorder %s2108_s23, 0 }
  0x3f   : > { %v409_v5 = vpack.c.bf16 %v408_v3, %v407_v2  ;;  %1591 = vmatpush3.bf16.msra.mxu1 %v1674_v7  ;;  %v599_v23 = vld [vmem:[#allocation2 + $0xa0] sm:$0xff]  ;;  %v592_v49 = vld [vmem:[#allocation2 + $0x68] sm:$0xff]  ;;  %s390_s29 = scalar_lea.vmem [#allocation5], %s1491_s11  ;;  %s1796_s16 = smov [#allocation5]  }
  0x40   : > { %1592 = vmatprep.subr.bf16.mxu1 %v1792_v0  ;;  %v1521_v24 = vcombine.high %v595_v22, %v599_v23  ;;  %v1520_v25 = vcombine.low %v595_v22, %v599_v23  ;;  %v603_v26 = vld [vmem:[#allocation2 + $0xc0] sm:$0xff]  ;;  %v1515_v53 = vcombine.high %v588_v48, %v592_v49  ;;  %v596_v54 = vld [vmem:[#allocation2 + $0x88] sm:$0xff]  ;;  %v1514_v56 = vcombine.low %v588_v48, %v592_v49  ;;  %v581_v23 = vld [vmem:[#allocation2 + $0x10] sm:$0xff]  ;;  %s1399_s28 = sshll.u32 %s390_s29, 4  ;;  %s1709_s21 = sshll.u32 %s1796_s16, 4  ;;  %s2044_s28 = int_to_ptr.vmem [resolvable:$true] %s1399_s28  ;;  %s1710_s21 = int_to_ptr.vmem [resolvable:$false] %s1709_s21 }
  0x41   : > { %1585 = vmatmul.mubr.msk.bf16.vlgmr.msra.gmra.mrb[0].mxu0 %vm411_vm2, %v409_v5  ;;  %v607_v27 = vld [vmem:[#allocation2 + $0xe0] sm:$0xff]  ;;  %v600_v55 = vld [vmem:[#allocation2 + $0xa8] sm:$0xff]  ;;  %s1705_s17 = scalar_lea.vmem %s2044_s28, 128  ;;  %s1711_s27 = scalar_lea.vmem %s1710_s21, 256 }
  0x42   : > { %964 = vmatpush1.bf16.msra.mxu0 %v1504_v13  ;;  %v1529_v28 = vcombine.high %v603_v26, %v607_v27  ;;  %v1528_v29 = vcombine.low %v603_v26, %v607_v27  ;;  %v611_v30 = vld [vmem:[#allocation2 + $0x100] sm:$0xff]  ;;  %v1523_v57 = vcombine.high %v596_v54, %v600_v55  ;;  %v604_v58 = vld [vmem:[#allocation2 + $0xc8] sm:$0xff]  ;;  %v1522_v60 = vcombine.low %v596_v54, %v600_v55  ;;  %v586_v27 = vld [vmem:[#allocation2 + $0x38] sm:$0xff]  ;;  %p1706_p8 = scmp.ne.s32.totalorder %s2044_s28, %s1705_s17  ;;  %p1712_p1 = scmp.lt.s32.totalorder %s2044_s28, %s1710_s21 }
  0x43   : > { %1593 = vmatpush3.bf16.msra.mxu1 %v1675_v8  ;;  %965 = vmatprep.subr.bf16.mxu0 %v1513_v20  ;;  %v615_v31 = vld [vmem:[#allocation2 + $0x120] sm:$0xff]  ;;  %v608_v59 = vld [vmem:[#allocation2 + $0xe8] sm:$0xff]  ;;  %v602_v54 = vld [vmem:[#allocation2 + $0xb8] sm:$0xff]  ;;  %p1713_p3 = scmp.lt.s32.totalorder %s1711_s27, %s1705_s17 }
  0x44   : > { %1594 = vmatprep.subr.bf16.mxu1 %v1792_v0  ;;  %v1537_v32 = vcombine.high %v611_v30, %v615_v31  ;;  %v1536_v33 = vcombine.low %v611_v30, %v615_v31  ;;  %v619_v34 = vld [vmem:[#allocation2 + $0x140] sm:$0xff]  ;;  %v1531_v61 = vcombine.high %v604_v58, %v608_v59  ;;  %v612_v62 = vld [vmem:[#allocation2 + $0x108] sm:$0xff]  ;;  %v1530_v0 = vcombine.low %v604_v58, %v608_v59  ;;  %v605_v59 = vld [vmem:[#allocation2 + $0xd0] sm:$0xff]  ;;  %p1707_p11 = pnand %p1706_p8, %p2115_p10 }
  0x45   : > { %v623_v35 = vld [vmem:[#allocation2 + $0x160] sm:$0xff]  ;;  %v616_v63 = vld [vmem:[#allocation2 + $0x128] sm:$0xff]  ;;  %v1794_v31 = vmov 0   ;;  %p1714_p5 = por %p1713_p3, %p1712_p1 }
  0x46   : > { %966 = vmatpush1.bf16.msra.mxu0 %v1512_v21  ;;  %v1545_v36 = vcombine.high %v619_v34, %v623_v35  ;;  %v1544_v37 = vcombine.low %v619_v34, %v623_v35  ;;  %v1539_v1 = vcombine.high %v612_v62, %v616_v63  ;;  %v620_v2 = vld [vmem:[#allocation2 + $0x148] sm:$0xff]  ;;  %v1538_v4 = vcombine.low %v612_v62, %v616_v63  ;;  %v627_v7 = vld [vmem:[#allocation2 + $0x180] sm:$0xff]  ;;  %v1503_v34 = vld [vmem:[%s2095_s6] ss:$0 sm:$0xff]  ;;  %p1708_p13 = pneg %p1707_p11 }
  0x47   : > { %1595 = vmatpush3.bf16.msra.mxu1 %v1676_v9  ;;  %967 = vmatprep.subr.bf16.mxu0 %v1521_v24  ;;  %v624_v3 = vld [vmem:[#allocation2 + $0x168] sm:$0xff]  ;;  %v631_v8 = vld [vmem:[#allocation2 + $0x1a0] sm:$0xff]  ;;  %v585_v24 = vld [vmem:[#allocation2 + $0x30] sm:$0xff] }
  0x48   : > { %1006 = vmatprep.subr.bf16.mxu1 %v1507_v19  ;;  %v1547_v5 = vcombine.high %v620_v2, %v624_v3  ;;  %v1546_v6 = vcombine.low %v620_v2, %v624_v3  ;;  %v628_v9 = vld [vmem:[#allocation2 + $0x188] sm:$0xff]  ;;  %v1553_v10 = vcombine.high %v627_v7, %v631_v8  ;;  %v1552_v12 = vcombine.low %v627_v7, %v631_v8  ;;  %v635_v15 = vld [vmem:[#allocation2 + $0x1c0] sm:$0xff]  ;;  %v610_v62 = vld [vmem:[#allocation2 + $0xf8] sm:$0xff]  ;;  %p1715_p6 = pnand %p1714_p5, %p1708_p13 }
  0x49   : > { %v632_v11 = vld [vmem:[#allocation2 + $0x1a8] sm:$0xff]  ;;  %v639_v16 = vld [vmem:[#allocation2 + $0x1e0] sm:$0xff]  ;;  %v1509_v26 = vcombine.high %v581_v23, %v585_v24  ;;  %995 = vmatprep.mubr.bf16.mxu0 %v1794_v31  ;;  %v613_v3 = vld [vmem:[#allocation2 + $0x110] sm:$0xff] }
  0x4a   : > { %968 = vmatpush1.bf16.msra.mxu0 %v1520_v25  ;;  %v1554_v13 = vcombine.low %v628_v9, %v632_v11  ;;  %v1555_v14 = vcombine.high %v628_v9, %v632_v11  ;;  %v636_v17 = vld [vmem:[#allocation2 + $0x1c8] sm:$0xff]  ;;  %v1560_v20 = vcombine.low %v635_v15, %v639_v16  ;;  %v582_v25 = vld [vmem:[#allocation2 + $0x18] sm:$0xff]  ;;  %v621_v11 = vld [vmem:[#allocation2 + $0x150] sm:$0xff] }
  0x4b   : > { %969 = vmatprep.subr.bf16.mxu0 %v1529_v28  ;;  %v640_v19 = vld [vmem:[#allocation2 + $0x1e8] sm:$0xff]  ;;  %v1508_v28 = vcombine.low %v581_v23, %v585_v24  ;;  %v1511_v30 = vcombine.high %v582_v25, %v586_v27 }
  0x4c   : > { %v1562_v21 = vcombine.low %v636_v17, %v640_v19  ;;  %v1563_v22 = vcombine.high %v636_v17, %v640_v19  ;;  %v629_v19 = vld [vmem:[#allocation2 + $0x190] sm:$0xff] }
  0x4e   : > { %970 = vmatpush1.bf16.msra.mxu0 %v1528_v29  ;;  %v1510_v29 = vcombine.low %v582_v25, %v586_v27  ;;  %v637_v27 = vld [vmem:[#allocation2 + $0x1d0] sm:$0xff] }
  0x4f   : > { %971 = vmatprep.subr.bf16.mxu0 %v1537_v32  ;;  %v1502_v32 = vld [vmem:[%s2094_s5] ss:$0 sm:$0xff] }
  0x52   : > { %972 = vmatpush1.bf16.msra.mxu0 %v1536_v33 }
  0x53   : > { %973 = vmatprep.subr.bf16.mxu0 %v1545_v36 }
  0x56   : > { %974 = vmatpush1.bf16.msra.mxu0 %v1544_v37 }
  0x57   : > { %975 = vmatprep.subr.bf16.mxu0 %v1553_v10 }
  0x5a   : > { %976 = vmatpush1.bf16.msra.mxu0 %v1552_v12  ;;  %v625_v12 = vld [vmem:[#allocation2 + $0x170] sm:$0xff] }
  0x5b   : > { %v1549_v17 = vcombine.high %v621_v11, %v625_v12  ;;  %v1548_v23 = vcombine.low %v621_v11, %v625_v12 }
 0x114   : > { %v453_v39 = vpop.f32.mrb[0].mxu0 }
 0x115   : > { %v467_v41 = vmul.f32 %v1495_v38, %v453_v39  ;;  %v1586_v42 = vpop.f32.mrb[1].mxu0 }
 0x116   : > { %v456_v43 = vpop.f32.mrb[2].mxu0  ;;  %v589_v42 = vld [vmem:[#allocation2 + $0x50] sm:$0xff] }
 0x117   : > { %v476_v44 = vadd.f32 %v1496_v40, %v467_v41  ;;  %v468_v45 = vmul.f32 %v1495_v38, %v456_v43  ;;  %v1587_v46 = vpop.f32.mrb[3].mxu0  ;;  %v593_v43 = vld [vmem:[#allocation2 + $0x70] sm:$0xff] }
 0x118   : > { %v1517_v49 = vcombine.high %v589_v42, %v593_v43  ;;  %v1516_v55 = vcombine.low %v589_v42, %v593_v43 }
 0x119   : > { %v477_v47 = vadd.f32 %v1496_v40, %v468_v45  ;;  %v478_v50 = vmax.f32 %v476_v44, 0.0  ;;  %v590_v44 = vld [vmem:[#allocation2 + $0x58] sm:$0xff] }
 0x11a   : > { %v594_v45 = vld [vmem:[#allocation2 + $0x78] sm:$0xff] }
 0x11b   : > { %v479_v51 = vmax.f32 %v477_v47, 0.0 }
 0x11d   : > { %v480_v52 = vpack.c.bf16 %v479_v51, %v478_v50  ;;  %v1519_v50 = vcombine.high %v590_v44, %v594_v45  ;;  %v597_v51 = vld [vmem:[#allocation2 + $0x90] sm:$0xff] }
 0x11f   : > { %1597 = vmatmul.mubr.msk.bf16.vlgmr.msra.gmra.mrb[0].mxu1 %vm513_vm3, %v480_v52  ;;  %v601_v52 = vld [vmem:[#allocation2 + $0xb0] sm:$0xff] }
 0x120   : > { %1007 = vmatpush1.bf16.msra.mxu1 %v1506_v18  ;;  %v1561_v18 = vcombine.high %v635_v15, %v639_v16  ;;  %1038 = vmatprep.mubr.bf16.mxu1 %v1794_v31  ;;  %v1524_v63 = vcombine.low %v597_v51, %v601_v52 }
 0x121   : > { %1008 = vmatprep.subr.bf16.mxu1 %v1515_v53  ;;  %v598_v53 = vld [vmem:[#allocation2 + $0x98] sm:$0xff] }
 0x122   : > { %977 = vmatprep.subr.bf16.mxu0 %v1561_v18  ;;  %v1527_v58 = vcombine.high %v598_v53, %v602_v54 }
 0x123   : > { %978 = vmatpush1.bf16.msra.mxu0 %v1560_v20  ;;  %v633_v20 = vld [vmem:[#allocation2 + $0x1b0] sm:$0xff] }
 0x124   : > { %1009 = vmatpush1.bf16.msra.mxu1 %v1514_v56  ;;  %1049 = vmatprep.subr.bf16.mxu0 %v1509_v26  ;;  %v1518_v56 = vcombine.low %v590_v44, %v594_v45  ;;  %v1557_v25 = vcombine.high %v629_v19, %v633_v20  ;;  %v1997_v44 = vld [vmem:[%s2098_s9] sm:$0xff] }
 0x125   : > { %1010 = vmatprep.subr.bf16.mxu1 %v1523_v57  ;;  %v1525_v57 = vcombine.high %v597_v51, %v601_v52 }
 0x128   : > { %1011 = vmatpush1.bf16.msra.mxu1 %v1522_v60  ;;  %v609_v60 = vld [vmem:[#allocation2 + $0xf0] sm:$0xff] }
 0x129   : > { %1012 = vmatprep.subr.bf16.mxu1 %v1531_v61  ;;  %v606_v61 = vld [vmem:[#allocation2 + $0xd8] sm:$0xff]  ;;  %v1532_v7 = vcombine.low %v605_v59, %v609_v60 }
 0x12a   : > { %v1535_v2 = vcombine.high %v606_v61, %v610_v62  ;;  %v1534_v8 = vcombine.low %v606_v61, %v610_v62 }
 0x12c   : > { %1013 = vmatpush1.bf16.msra.mxu1 %v1530_v0  ;;  %v1526_v0 = vcombine.low %v598_v53, %v602_v54 }
 0x12d   : > { %1014 = vmatprep.subr.bf16.mxu1 %v1539_v1  ;;  %v1533_v1 = vcombine.high %v605_v59, %v609_v60 }
 0x130   : > { %1015 = vmatpush1.bf16.msra.mxu1 %v1538_v4  ;;  %v617_v4 = vld [vmem:[#allocation2 + $0x130] sm:$0xff] }
 0x131   : > { %1016 = vmatprep.subr.bf16.mxu1 %v1547_v5  ;;  %v614_v5 = vld [vmem:[#allocation2 + $0x118] sm:$0xff]  ;;  %v1541_v9 = vcombine.high %v613_v3, %v617_v4  ;;  %v1540_v15 = vcombine.low %v613_v3, %v617_v4 }
 0x134   : > { %1017 = vmatpush1.bf16.msra.mxu1 %v1546_v6  ;;  %v618_v6 = vld [vmem:[#allocation2 + $0x138] sm:$0xff] }
 0x135   : > { %1018 = vmatprep.subr.bf16.mxu1 %v1555_v14  ;;  %v1543_v10 = vcombine.high %v614_v5, %v618_v6  ;;  %v626_v14 = vld [vmem:[#allocation2 + $0x178] sm:$0xff]  ;;  %v1542_v16 = vcombine.low %v614_v5, %v618_v6 }
 0x138   : > { %1019 = vmatpush1.bf16.msra.mxu1 %v1554_v13  ;;  %v622_v13 = vld [vmem:[#allocation2 + $0x158] sm:$0xff] }
 0x139   : > { %1020 = vmatprep.subr.bf16.mxu1 %v1563_v22  ;;  %v1551_v18 = vcombine.high %v622_v13, %v626_v14  ;;  %v634_v22 = vld [vmem:[#allocation2 + $0x1b8] sm:$0xff]  ;;  %v1550_v24 = vcombine.low %v622_v13, %v626_v14 }
 0x13c   : > { %1021 = vmatpush1.bf16.msra.mxu1 %v1562_v21  ;;  %v630_v21 = vld [vmem:[#allocation2 + $0x198] sm:$0xff] }
 0x13d   : > { %1092 = vmatprep.subr.bf16.mxu1 %v1511_v30  ;;  %v1559_v26 = vcombine.high %v630_v21, %v634_v22  ;;  %v642_v30 = vld [vmem:[#allocation2 + $0x1f8] sm:$0xff] }
 0x1f2   : > { %v551_v33 = vpop.f32.mrb[0].mxu1 }
 0x1f3   : > { %v565_v35 = vmul.f32 %v1502_v32, %v551_v33  ;;  %v1598_v36 = vpop.f32.mrb[1].mxu1 }
 0x1f4   : > { %v554_v37 = vpop.f32.mrb[2].mxu1 }
 0x1f5   : > { %v574_v38 = vadd.f32 %v1503_v34, %v565_v35  ;;  %v566_v39 = vmul.f32 %v1502_v32, %v554_v37  ;;  %v1599_v40 = vpop.f32.mrb[3].mxu1  ;;  %v1558_v32 = vcombine.low %v630_v21, %v634_v22  ;;  %v1137_v37 = vlaneseq }
 0x1f7   : > { %v575_v41 = vadd.f32 %v1503_v34, %v566_v39  ;;  %v576_v46 = vmax.f32 %v574_v38, 0.0  ;;  %v1983_v38 = vshrl.u32 %v1137_v37, 7 }
 0x1f9   : > { %v577_v47 = vmax.f32 %v575_v41, 0.0  ;;  %v1139_v39 = vsub.s32 0, %v1983_v38  ;;  %v1147_v40 = vsub.s32 2, %v1983_v38  ;;  %v1990_v41 = vld [vmem:[%s2097_s8] sm:$0xff]  ;;  %v1143_v42 = vsub.s32 1, %v1983_v38 }
 0x1fa   : > { %v1151_v43 = vsub.s32 3, %v1983_v38 }
 0x1fb   : > { %v1977_v48 = vpack.c.bf16 %v577_v47, %v576_v46  ;;  %v1140_v45 = vrot.slane %v1990_v41, %v1139_v39  ;;  %v1148_v46 = vrot.slane %v1990_v41, %v1147_v40  ;;  %v1144_v47 = vrot.slane %v1990_v41, %v1143_v42 }
 0x1fc   : > { %v1202_v53 = vrot.slane %v1997_v44, %v1143_v42  ;;  %v1210_v54 = vrot.slane %v1997_v44, %v1151_v43 }
 0x1fd   : > { %996 = vmatmul.mubr.bf16.vlgmr.msra.gmra.mrb[4].mxu0 %v1977_v48  ;;  %1039 = vmatmul.mubr.bf16.vlgmr.msra.gmra.mrb[4].mxu1 %v1977_v48 }
 0x1fe   : > { %1050 = vmatpush1.bf16.msra.mxu0 %v1508_v28  ;;  %1093 = vmatpush1.bf16.msra.mxu1 %v1510_v29  ;;  %v641_v28 = vld [vmem:[#allocation2 + $0x1f0] sm:$0xff]  ;;  %v638_v29 = vld [vmem:[#allocation2 + $0x1d8] sm:$0xff] }
 0x1ff   : > { %1051 = vmatprep.subr.bf16.mxu0 %v1517_v49  ;;  %1094 = vmatprep.subr.bf16.mxu1 %v1519_v50  ;;  %v1565_v33 = vcombine.high %v637_v27, %v641_v28  ;;  %v1567_v34 = vcombine.high %v638_v29, %v642_v30  ;;  %v1564_v35 = vcombine.low %v637_v27, %v641_v28 }
 0x200   : > { %1081 = vmatprep.mubr.bf16.mxu0 %v1794_v31  ;;  %1124 = vmatprep.mubr.bf16.mxu1 %v1794_v31  ;;  %v1556_v31 = vcombine.low %v629_v19, %v633_v20  ;;  %v1566_v36 = vcombine.low %v638_v29, %v642_v30  ;;  %v1198_v49 = vrot.slane %v1997_v44, %v1139_v39 }
 0x201   : > { %v1206_v50 = vrot.slane %v1997_v44, %v1147_v40 }
 0x202   : > { %1052 = vmatpush1.bf16.msra.mxu0 %v1516_v55  ;;  %1095 = vmatpush1.bf16.msra.mxu1 %v1518_v56 }
 0x203   : > { %1053 = vmatprep.subr.bf16.mxu0 %v1525_v57  ;;  %1096 = vmatprep.subr.bf16.mxu1 %v1527_v58 }
 0x206   : > { %1054 = vmatpush1.bf16.msra.mxu0 %v1524_v63  ;;  %1097 = vmatpush1.bf16.msra.mxu1 %v1526_v0 }
 0x207   : > { %1055 = vmatprep.subr.bf16.mxu0 %v1533_v1  ;;  %1098 = vmatprep.subr.bf16.mxu1 %v1535_v2 }
 0x20a   : > { %1056 = vmatpush1.bf16.msra.mxu0 %v1532_v7  ;;  %1099 = vmatpush1.bf16.msra.mxu1 %v1534_v8 }
 0x20b   : > { %1057 = vmatprep.subr.bf16.mxu0 %v1541_v9  ;;  %1100 = vmatprep.subr.bf16.mxu1 %v1543_v10 }
 0x20e   : > { %1058 = vmatpush1.bf16.msra.mxu0 %v1540_v15  ;;  %1101 = vmatpush1.bf16.msra.mxu1 %v1542_v16 }
 0x20f   : > { %1059 = vmatprep.subr.bf16.mxu0 %v1549_v17  ;;  %1102 = vmatprep.subr.bf16.mxu1 %v1551_v18 }
 0x212   : > { %1060 = vmatpush1.bf16.msra.mxu0 %v1548_v23  ;;  %1103 = vmatpush1.bf16.msra.mxu1 %v1550_v24 }
 0x213   : > { %1061 = vmatprep.subr.bf16.mxu0 %v1557_v25  ;;  %1104 = vmatprep.subr.bf16.mxu1 %v1559_v26 }
 0x216   : > { %1062 = vmatpush1.bf16.msra.mxu0 %v1556_v31  ;;  %1105 = vmatpush1.bf16.msra.mxu1 %v1558_v32  ;;  %v1795_v32 = vmov 1966171168  }
 0x217   : > { %1063 = vmatprep.subr.bf16.mxu0 %v1565_v33  ;;  %1106 = vmatprep.subr.bf16.mxu1 %v1567_v34  ;;  %v1337_v33 = vunpack.c.l.s4 %v1795_v32 }
 0x21a   : > { %1064 = vmatpush1.bf16.msra.mxu0 %v1564_v35  ;;  %1107 = vmatpush1.bf16.msra.mxu1 %v1566_v36 }
 0x21d   : > { %1082 = vmatmul.mubr.bf16.vlgmr.msra.gmra.mrb[8].mxu0 %v1977_v48  ;;  %1125 = vmatmul.mubr.bf16.vlgmr.msra.gmra.mrb[8].mxu1 %v1977_v48  ;;  %v1152_v48 = vrot.slane %v1990_v41, %v1151_v43 }
 0x2d0   : > { %v997_v51 = vpop.f32.mrb[4].mxu0  ;;  %v1040_v52 = vpop.f32.mrb[4].mxu1 }
 0x2d1   : > { %v1177_v55 = vmul.f32 %v1140_v45, %v997_v51  ;;  %v1179_v56 = vmul.f32 %v1148_v46, %v1040_v52  ;;  %v999_v57 = vpop.f32.mrb[5].mxu0  ;;  %v1042_v58 = vpop.f32.mrb[5].mxu1 }
 0x2d2   : > { %v1178_v59 = vmul.f32 %v1144_v47, %v999_v57  ;;  %v1180_v60 = vmul.f32 %v1152_v48, %v1042_v58  ;;  %v1001_v61 = vpop.f32.mrb[6].mxu0  ;;  %v1044_v62 = vpop.f32.mrb[6].mxu1  ;;  %v1155_v58 = vsub.s32 4, %v1983_v38 }
 0x2d3   : > { %v1235_v63 = vadd.f32 %v1198_v49, %v1177_v55  ;;  %v1237_v0 = vadd.f32 %v1206_v50, %v1179_v56  ;;  %v1185_v1 = vmul.f32 %v1140_v45, %v1001_v61  ;;  %v1187_v2 = vmul.f32 %v1148_v46, %v1044_v62  ;;  %v1003_v3 = vpop.f32.mrb[7].mxu0  ;;  %v1046_v4 = vpop.f32.mrb[7].mxu1 }
 0x2d4   : > { %v1236_v5 = vadd.f32 %v1202_v53, %v1178_v59  ;;  %v1238_v6 = vadd.f32 %v1210_v54, %v1180_v60  ;;  %v1186_v7 = vmul.f32 %v1144_v47, %v1003_v3  ;;  %v1188_v8 = vmul.f32 %v1152_v48, %v1046_v4 }
 0x2d5   : > { %v1243_v9 = vadd.f32 %v1198_v49, %v1185_v1  ;;  %v1245_v10 = vadd.f32 %v1206_v50, %v1187_v2  ;;  %v1251_v13 = vmax.f32 %v1235_v63, 0.0  ;;  %v1253_v14 = vmax.f32 %v1237_v0, 0.0 }
 0x2d6   : > { %v1244_v11 = vadd.f32 %v1202_v53, %v1186_v7  ;;  %v1246_v12 = vadd.f32 %v1210_v54, %v1188_v8  ;;  %v1252_v17 = vmax.f32 %v1236_v5, 0.0  ;;  %v1254_v18 = vmax.f32 %v1238_v6, 0.0 }
 0x2d7   : > { %v1259_v15 = vmax.f32 %v1243_v9, 0.0  ;;  %v1261_v16 = vmax.f32 %v1245_v10, 0.0  ;;  %v1338_v45 = vunpack.c.0.s8 %v1337_v33  ;;  %v1163_v59 = vsub.s32 6, %v1983_v38 }
 0x2d8   : > { %v1260_v19 = vmax.f32 %v1244_v11, 0.0  ;;  %v1262_v20 = vmax.f32 %v1246_v12, 0.0  ;;  %v1159_v62 = vsub.s32 5, %v1983_v38  ;;  %v1167_v63 = vsub.s32 7, %v1983_v38 }
 0x2d9   : > { %v1267_v21 = vmax.f32 %v1251_v13, %v1259_v15  ;;  %v1281_v22 = vmax.f32 %v1253_v14, %v1261_v16  ;;  %v2008_v54 = vsub.s32 %v1338_v45, %v1983_v38  ;;  %v1156_v1 = vrot.slane %v1990_v41, %v1155_v58 }
 0x2da   : > { %v1274_v23 = vmax.f32 %v1252_v17, %v1260_v19  ;;  %v1288_v24 = vmax.f32 %v1254_v18, %v1262_v20  ;;  %v1164_v2 = vrot.slane %v1990_v41, %v1163_v59  ;;  %v1160_v3 = vrot.slane %v1990_v41, %v1159_v62 }
 0x2db   : > { %v1268_v25 = vrot.slane %v1267_v21, 4  ;;  %v1282_v26 = vrot.slane %v1281_v22, 4  ;;  %v1168_v4 = vrot.slane %v1990_v41, %v1167_v63  ;;  %v1214_v5 = vrot.slane %v1997_v44, %v1155_v58 }
 0x2dc   : > { %v1275_v27 = vrot.slane %v1274_v23, 4  ;;  %v1289_v28 = vrot.slane %v1288_v24, 4  ;;  %v1222_v6 = vrot.slane %v1997_v44, %v1163_v59  ;;  %v1218_v9 = vrot.slane %v1997_v44, %v1159_v62 }
 0x2dd   : > { %v1269_v29 = vmax.f32 %v1267_v21, %v1268_v25  ;;  %v1283_v30 = vmax.f32 %v1281_v22, %v1282_v26  ;;  %v1226_v38 = vrot.slane %v1997_v44, %v1167_v63 }
 0x2de   : > { %v1276_v31 = vmax.f32 %v1274_v23, %v1275_v27  ;;  %v1290_v34 = vmax.f32 %v1288_v24, %v1289_v28 }
 0x2df   : > { %v1270_v35 = vrot.slane %v1269_v29, 2  ;;  %v1284_v36 = vrot.slane %v1283_v30, 2 }
 0x2e0   : > { %v1277_v37 = vrot.slane %v1276_v31, 2  ;;  %v1291_v39 = vrot.slane %v1290_v34, 2 }
 0x2e1   : > { %v1271_v40 = vmax.f32 %v1269_v29, %v1270_v35  ;;  %v1285_v42 = vmax.f32 %v1283_v30, %v1284_v36 }
 0x2e2   : > { %v1278_v43 = vmax.f32 %v1276_v31, %v1277_v37  ;;  %v1292_v46 = vmax.f32 %v1290_v34, %v1291_v39 }
 0x2e3   : > { %v1272_v47 = vrot.slane %v1271_v40, 1  ;;  %v1286_v48 = vrot.slane %v1285_v42, 1 }
 0x2e4   : > { %v1279_v49 = vrot.slane %v1278_v43, 1  ;;  %v1293_v50 = vrot.slane %v1292_v46, 1 }
 0x2e5   : > { %v1273_v51 = vmax.f32 %v1271_v40, %v1272_v47  ;;  %v1287_v52 = vmax.f32 %v1285_v42, %v1286_v48 }
 0x2e6   : > { %v1280_v53 = vmax.f32 %v1278_v43, %v1279_v49  ;;  %v1294_v55 = vmax.f32 %v1292_v46, %v1293_v50 }
 0x2e8   : > { %v1332_v56 = vcombine.low %v1273_v51, %v1280_v53  ;;  %v1333_v57 = vcombine.low %v1287_v52, %v1294_v55 }
 0x2ea   : > { %v2013_v60 = vrot.slane %v1332_v56, %v2008_v54  ;;  %v2016_v61 = vrot.slane %v1333_v57, %v2008_v54 }
 0x2ec   : > { %v1364_v0 = vcombine.low %v2013_v60, %v2016_v61 }
 0x2f0   : > { %v1083_v7 = vpop.f32.mrb[8].mxu0  ;;  %v1126_v8 = vpop.f32.mrb[8].mxu1 }
 0x2f1   : > { %v1181_v10 = vmul.f32 %v1156_v1, %v1083_v7  ;;  %v1183_v11 = vmul.f32 %v1164_v2, %v1126_v8  ;;  %v1085_v12 = vpop.f32.mrb[9].mxu0  ;;  %v1128_v13 = vpop.f32.mrb[9].mxu1 }
 0x2f2   : > { %v1182_v14 = vmul.f32 %v1160_v3, %v1085_v12  ;;  %v1184_v15 = vmul.f32 %v1168_v4, %v1128_v13  ;;  %v1087_v16 = vpop.f32.mrb[10].mxu0  ;;  %v1130_v17 = vpop.f32.mrb[10].mxu1  ;;  %v1372_v13 = vrot.slane %v1364_v0, %v2008_v54 }
 0x2f3   : > { %v1239_v18 = vadd.f32 %v1214_v5, %v1181_v10  ;;  %v1241_v41 = vadd.f32 %v1222_v6, %v1183_v11  ;;  %v1189_v19 = vmul.f32 %v1156_v1, %v1087_v16  ;;  %v1191_v20 = vmul.f32 %v1164_v2, %v1130_v17  ;;  %v1089_v21 = vpop.f32.mrb[11].mxu0  ;;  %v1132_v22 = vpop.f32.mrb[11].mxu1 }
 0x2f4   : > { %v1240_v23 = vadd.f32 %v1218_v9, %v1182_v14  ;;  %v1242_v24 = vadd.f32 %v1226_v38, %v1184_v15  ;;  %v1190_v25 = vmul.f32 %v1160_v3, %v1089_v21  ;;  %v1192_v26 = vmul.f32 %v1168_v4, %v1132_v22 }
 0x2f5   : > { %v1247_v27 = vadd.f32 %v1214_v5, %v1189_v19  ;;  %v1249_v44 = vadd.f32 %v1222_v6, %v1191_v20  ;;  %v1255_v30 = vmax.f32 %v1239_v18, 0.0  ;;  %v1257_v31 = vmax.f32 %v1241_v41, 0.0 }
 0x2f6   : > { %v1248_v28 = vadd.f32 %v1218_v9, %v1190_v25  ;;  %v1250_v29 = vadd.f32 %v1226_v38, %v1192_v26  ;;  %v1256_v34 = vmax.f32 %v1240_v23, 0.0  ;;  %v1258_v35 = vmax.f32 %v1242_v24, 0.0 }
 0x2f7   : > { %v1263_v32 = vmax.f32 %v1247_v27, 0.0  ;;  %v1265_v33 = vmax.f32 %v1249_v44, 0.0 }
 0x2f8   : > { %v1264_v36 = vmax.f32 %v1248_v28, 0.0  ;;  %v1266_v37 = vmax.f32 %v1250_v29, 0.0 }
 0x2f9   : > { %v1295_v39 = vmax.f32 %v1255_v30, %v1263_v32  ;;  %v1309_v40 = vmax.f32 %v1257_v31, %v1265_v33 }
 0x2fa   : > { %v1302_v42 = vmax.f32 %v1256_v34, %v1264_v36  ;;  %v1316_v43 = vmax.f32 %v1258_v35, %v1266_v37 }
 0x2fb   : > { %v1296_v45 = vrot.slane %v1295_v39, 4  ;;  %v1310_v46 = vrot.slane %v1309_v40, 4 }
 0x2fc   : > { %v1303_v47 = vrot.slane %v1302_v42, 4  ;;  %v1317_v48 = vrot.slane %v1316_v43, 4 }
 0x2fd   : > { %v1297_v49 = vmax.f32 %v1295_v39, %v1296_v45  ;;  %v1311_v50 = vmax.f32 %v1309_v40, %v1310_v46 }
 0x2fe   : > { %v1304_v51 = vmax.f32 %v1302_v42, %v1303_v47  ;;  %v1318_v52 = vmax.f32 %v1316_v43, %v1317_v48 }
 0x2ff   : > { %v1298_v53 = vrot.slane %v1297_v49, 2  ;;  %v1312_v55 = vrot.slane %v1311_v50, 2 }
 0x300   : > { %v1305_v56 = vrot.slane %v1304_v51, 2  ;;  %v1319_v57 = vrot.slane %v1318_v52, 2 }
 0x301   : > { %v1299_v58 = vmax.f32 %v1297_v49, %v1298_v53  ;;  %v1313_v59 = vmax.f32 %v1311_v50, %v1312_v55 }
 0x302   : > { %v1306_v62 = vmax.f32 %v1304_v51, %v1305_v56  ;;  %v1320_v63 = vmax.f32 %v1318_v52, %v1319_v57 }
 0x303   : > { %v1300_v1 = vrot.slane %v1299_v58, 1  ;;  %v1314_v2 = vrot.slane %v1313_v59, 1 }
 0x304   : > { %v1307_v3 = vrot.slane %v1306_v62, 1  ;;  %v1321_v4 = vrot.slane %v1320_v63, 1 }
 0x305   : > { %v1301_v5 = vmax.f32 %v1299_v58, %v1300_v1  ;;  %v1315_v6 = vmax.f32 %v1313_v59, %v1314_v2 }
 0x306   : > { %v1308_v7 = vmax.f32 %v1306_v62, %v1307_v3  ;;  %v1322_v8 = vmax.f32 %v1320_v63, %v1321_v4 }
 0x308   : > { %v1334_v9 = vcombine.low %v1301_v5, %v1308_v7  ;;  %v1335_v38 = vcombine.low %v1315_v6, %v1322_v8 }
 0x30a   : > { %v1356_v10 = vrot.slane %v1334_v9, %v2008_v54  ;;  %v1363_v11 = vrot.slane %v1335_v38, %v2008_v54 }
 0x30c   : > { %v1365_v12 = vcombine.low %v1356_v10, %v1363_v11 }
 0x30e   : > { %v1379_v14 = vrot.slane %v1365_v12, %v2008_v54 }
 0x310   : > { %v1380_v15 = vcombine.low %v1372_v13, %v1379_v14 }
 0x312   : > { %1383 = vst [vmem:[%s390_s29] sm:$0xff] %v1380_v15 }
 0x313   : > { %1718 = shalt.err (!%p1715_p6)
}
 0x314   : > { %s1719_s30 = scalar_lea.hbm %s2042_s19, 128  ;;  %s1723_s29 = scalar_lea.hbm %s2099_s10, 256 }
 0x315   : > { %p1720_p7 = scmp.ne.s32.totalorder %s2042_s19, %s1719_s30  ;;  %p1724_p0 = scmp.lt.u32.totalorder %s2042_s19, %s2099_s10 }
 0x316   : > { %p1725_p2 = scmp.lt.u32.totalorder %s1723_s29, %s1719_s30  ;;  %p1727_p8 = scmp.lt.u32.totalorder %s1719_s30, %s2042_s19 }
 0x317   : > { %p1721_p9 = pnand %p1720_p7, %p2115_p10 }
 0x318   : > { %p1726_p4 = por %p1725_p2, %p1724_p0 }
 0x319   : > { %p1722_p12 = pneg %p1721_p9 }
 0x31a   : > { %p1728_p11 = por %p1727_p8, %p1726_p4 }
 0x31c   : > { %p1729_p13 = pnand %p1728_p11, %p1722_p12 }
 0x31e   : > { %1732 = shalt.err (!%p1729_p13)
}
 0x31f   : > { %1604 = dma.vmem_to_hbm [thread:$0]  (%p2115_p10), %s2044_s28, 128, %s2042_s19, %s1385_s24  }
 0x320 PF: > { %p1616_p1 = scmp.ge.s32.totalorder %s1787_s18, 2  ;;  %s1411_s17 = sand.u32 1, %s1767_s13  }
 0x321   : > { %p2116_p3 = scmp.ne.s32.totalorder %s2109_s25, 0  ;;  %s1412_s16 = scalar_lea.sflag [#allocation4], %s1411_s17 }
 0x323   : > { %p1611_p5 = pnand %p1616_p1, %p2116_p3 }
 0x325   : > { %1762 = dma.done.wait (!%p1611_p5), %s1412_s16, 128  }
 0x326   : > { %1764 = vsyncadd (!%p1611_p5), %s1412_s16, 4294967168  ;;  %s24_s18 = sadd.s32 1, %s1787_s18   ;;  %s2117_s16 = sld [smem:[#allocation8_spill]] }
 0x327   : > { %p21_p6 = scmp.ge.s32.totalorder %s24_s18, 4   ;;  %s2118_s17 = sld [smem:[#allocation9_spill]] }
 0x328   : > { %s2119_s13 = smov %s1771_s14  ;;  %s2120_s14 = smov %s1775_s15 }
 0x329   : > { %s2121_s15 = smov %s1905_s26  ;;  %23 = sbr.rel (!%p21_p6) target bundleno = 5 (0x5), region = 104 }
 0x330   :  { %1417 = vsyncpa [#allocation3], 1 }
 0x331   :  { %1419 = vsyncpa [#allocation3 + $0x1], 1 }
 0x332   :  { %1420 = vsyncpa [#allocation4], 1 }
 0x333   :  { %1422 = vsyncpa [#allocation4 + $0x1], 1 }

</bundles_post_ra>
